<compile_context>
chip_gen: v5e
topology: v5e:2x2
jax: 0.10.0
libtpu: 0.0.40
codegen_flags: <defaults>
</compile_context>

<pallas_src>
import jax
import jax.numpy as jnp
from jax.experimental import pallas as pl
from jax.experimental.pallas import tpu as pltpu


IN_FEATS = 204          # raw concatenated feature width (nn.Linear(204, n_actor))


def _round_up(x, m):
    return (x + m - 1) // m * m


# ---------------------------------------------------------------------------
# Pallas kernel: fused MLP  (enc1 -> relu -> enc2 -> relu -> {mu, log_var})
# ---------------------------------------------------------------------------
def ego_react_kernel(x_ref, w1_ref, b1_ref, w2_ref, b2_ref,
                     wmu_ref, bmu_ref, wlv_ref, blv_ref,
                     mu_ref, lv_ref):
    x = x_ref[...]                                                # (TILE_N, 204)

    # hid = relu(enc1(data_cat))
    h = jnp.dot(x, w1_ref[...], preferred_element_type=jnp.float32) + b1_ref[...]
    h = jnp.maximum(h, 0.0)

    # hid = relu(enc2(hid))
    h = jnp.dot(h, w2_ref[...], preferred_element_type=jnp.float32) + b2_ref[...]
    h = jnp.maximum(h, 0.0)

    # two heads written straight to their own HBM-backed outputs
    mu_ref[...] = (jnp.dot(h, wmu_ref[...], preferred_element_type=jnp.float32)
                   + bmu_ref[...]).astype(mu_ref.dtype)
    lv_ref[...] = (jnp.dot(h, wlv_ref[...], preferred_element_type=jnp.float32)
                   + blv_ref[...]).astype(lv_ref.dtype)


# ---------------------------------------------------------------------------
# pallas_call wrapper: row-tiled ragged grid, resident weights
# ---------------------------------------------------------------------------
def _run_mlp(data_cat, params, gan_noise_dim, *, tile_n=1024):
    w1, b1, w2, b2, wmu, bmu, wlv, blv = params
    n_actor = w1.shape[1]
    n_rows = data_cat.shape[0]
    data_cat = data_cat.astype(jnp.float32)

    # Clamp the tile so the row grid has >= 2 steps (keeps both v7x TCs busy on
    # small N); otherwise default 1024 (sweep 1024-2048 on v5e/v6e).
    tile_n = max(8, min(tile_n, _round_up(pl.cdiv(n_rows, 2), 8)))
    grid = (pl.cdiv(n_rows, tile_n),)          # ragged last block handled by Pallas

    const = lambda i: (0, 0)                   # weights/biases: resident across grid
    in_specs = [
        pl.BlockSpec((tile_n, IN_FEATS), lambda i: (i, 0)),   # x row tile (204 = full dim)
        pl.BlockSpec(w1.shape, const),
        pl.BlockSpec(b1.shape, const),
        pl.BlockSpec(w2.shape, const),
        pl.BlockSpec(b2.shape, const),
        pl.BlockSpec(wmu.shape, const),
        pl.BlockSpec(bmu.shape, const),
        pl.BlockSpec(wlv.shape, const),
        pl.BlockSpec(blv.shape, const),
    ]
    out_specs = (
        pl.BlockSpec((tile_n, gan_noise_dim), lambda i: (i, 0)),   # mu
        pl.BlockSpec((tile_n, gan_noise_dim), lambda i: (i, 0)),   # log_var
    )
    out_shape = (
        jax.ShapeDtypeStruct((n_rows, gan_noise_dim), jnp.float32),
        jax.ShapeDtypeStruct((n_rows, gan_noise_dim), jnp.float32),
    )

    # Cost hint reflecting the real (un-padded) footprint: one input pass, two
    # output passes, weights once.
    flops = 2 * n_rows * n_actor * (IN_FEATS + n_actor + 2 * gan_noise_dim)
    bytes_accessed = 4 * (n_rows * (IN_FEATS + 2 * gan_noise_dim)
                          + w1.size + b1.size + w2.size + b2.size
                          + wmu.size + bmu.size + wlv.size + blv.size)
    cost = pl.CostEstimate(flops=flops, transcendentals=0,
                           bytes_accessed=bytes_accessed)

    # TODO(synk): for v5e with n_actor < 128, zero-padding n_actor up to 128 in
    # w1/w2/heads would make the intermediate lane-dense; skipped since the
    # kernel is HBM-bound and the compute waste is hidden.
    mu, lv = pl.pallas_call(
        ego_react_kernel,
        out_shape=out_shape,
        grid=grid,
        in_specs=in_specs,
        out_specs=out_specs,
        compiler_params=pltpu.CompilerParams(
            dimension_semantics=("parallel",),     # megacore sharding on v7x
            vmem_limit_bytes=48 << 20),            # > default scoped, < v7x physical
        cost_estimate=cost,
    )(data_cat, w1, b1, w2, b2, wmu, bmu, wlv, blv)
    return mu, lv


# ---------------------------------------------------------------------------
# Module wrapper (mirrors EgoReactEncodeNet.forward)
# ---------------------------------------------------------------------------
def ego_react_encode_net_forward(ego_fut_traj, hid, params, config, *, tile_n=1024):
    n_actor = config["n_actor"]
    gan_noise_dim = config["gan_noise_dim"]
    # The PyTorch .view(-1, 6, n_actor) followed by fixed 30-row slicing only
    # preserves the row count when gan_noise_dim == 6 * n_actor.
    assert gan_noise_dim == 6 * n_actor, "gan_noise_dim must equal 6 * n_actor"

    # data_cat = torch.cat([to_float(datas[i]).view(-1, 204) ...], dim=0)
    data_cat = jnp.concatenate(
        [d.astype(jnp.float32).reshape(-1, IN_FEATS) for d in hid], axis=0)

    mu_flat, lv_flat = _run_mlp(data_cat, params, gan_noise_dim, tile_n=tile_n)

    # .view(-1, 6, n_actor)
    mus = mu_flat.reshape(-1, 6, n_actor)
    log_vars = lv_flat.reshape(-1, 6, n_actor)

    # slice into 30-row chunks, one per element of ego_fut_traj
    n_batch = len(ego_fut_traj)
    mus = [mus[30 * i:30 * (i + 1), :, :] for i in range(n_batch)]
    log_vars = [log_vars[30 * i:30 * (i + 1), :, :] for i in range(n_batch)]
    return [mus, log_vars]


# ---------------------------------------------------------------------------
# Deterministic parameter init (shapes from __init__)
# ---------------------------------------------------------------------------
def init_params(key, config):
    n_actor = config["n_actor"]
    gan = config["gan_noise_dim"]
    ks = jax.random.split(key, 8)

    def lin(kw, kb, fan_in, fan_out):
        bound = 1.0 / jnp.sqrt(fan_in)
        w = jax.random.uniform(kw, (fan_in, fan_out), jnp.float32, -bound, bound)
        b = jax.random.uniform(kb, (1, fan_out), jnp.float32, -bound, bound)
        return w, b

    w1, b1 = lin(ks[0], ks[1], IN_FEATS, n_actor)   # enc1
    w2, b2 = lin(ks[2], ks[3], n_actor, n_actor)    # enc2
    wmu, bmu = lin(ks[4], ks[5], n_actor, gan)      # mu_gen
    wlv, blv = lin(ks[6], ks[7], n_actor, gan)      # log_varience_gen
    return (w1, b1, w2, b2, wmu, bmu, wlv, blv)


# ---------------------------------------------------------------------------
# Pure-JAX reference for the correctness check
# ---------------------------------------------------------------------------
def reference_mlp(data_cat, params):
    w1, b1, w2, b2, wmu, bmu, wlv, blv = params
    h = jnp.maximum(data_cat @ w1 + b1, 0.0)
    h = jnp.maximum(h @ w2 + b2, 0.0)
    return h @ wmu + bmu, h @ wlv + blv


if __name__ == "__main__":
    # small config: gan_noise_dim = 6 * n_actor so that .view(-1, 6, n_actor)
    # keeps the row count (as the downstream 30-row slicing requires).
    config = {"n_actor": 32, "gan_noise_dim": 6 * 32}

    key = jax.random.PRNGKey(0)
    k_params, k_hid0, k_hid1, k_traj = jax.random.split(key, 4)
    params = init_params(k_params, config)

    # hid: list of per-sample feature tensors, each viewed to (-1, 204) -> 30 rows
    hid = [
        jax.random.normal(k_hid0, (30, 204), jnp.float32),
        jax.random.normal(k_hid1, (30, 204), jnp.float32),
    ]
    # ego_fut_traj: only its length is used by the forward pass
    ego_fut_traj = list(jax.random.normal(k_traj, (2, 30, 2), jnp.float32))

    # default tile_n=1024 gets clamped to 32 for these 60 rows, giving a
    # 2-step grid with a ragged (28-row) last block — exercises both the
    # multi-step pipeline and the masked partial tile.
    out = ego_react_encode_net_forward(ego_fut_traj, hid, params, config)
    mus, log_vars = out
    jax.block_until_ready(mus[0])
    jax.block_until_ready(log_vars[-1])

    # sanity: shapes + numerics vs pure-JAX reference
    assert len(mus) == 2 and len(log_vars) == 2
    assert mus[0].shape == (30, 6, config["n_actor"])
    assert log_vars[1].shape == (30, 6, config["n_actor"])

    data_cat = jnp.concatenate([d.reshape(-1, IN_FEATS) for d in hid], axis=0)
    mu_ref, lv_ref = reference_mlp(data_cat, params)
    mu_got = jnp.concatenate([m.reshape(30, -1) for m in mus], axis=0)
    lv_got = jnp.concatenate([l.reshape(30, -1) for l in log_vars], axis=0)
    assert jnp.allclose(mu_got, mu_ref, atol=1e-4, rtol=1e-4)
    assert jnp.allclose(lv_got, lv_ref, atol=1e-4, rtol=1e-4)

    print("KERNEL_OK")
</pallas_src>

<mosaic_0001>
module attributes {stable_mosaic.version = 11 : i64} {
  func.func @ego_react_kernel(%arg0: i32, %arg1: memref<32x204xf32, #tpu.memory_space<vmem>>, %arg2: memref<204x32xf32, #tpu.memory_space<vmem>>, %arg3: memref<1x32xf32, #tpu.memory_space<vmem>>, %arg4: memref<32x32xf32, #tpu.memory_space<vmem>>, %arg5: memref<1x32xf32, #tpu.memory_space<vmem>>, %arg6: memref<32x192xf32, #tpu.memory_space<vmem>>, %arg7: memref<1x192xf32, #tpu.memory_space<vmem>>, %arg8: memref<32x192xf32, #tpu.memory_space<vmem>>, %arg9: memref<1x192xf32, #tpu.memory_space<vmem>>, %arg10: memref<32x192xf32, #tpu.memory_space<vmem>>, %arg11: memref<32x192xf32, #tpu.memory_space<vmem>>) attributes {dimension_semantics = [#tpu.dimension_semantics<parallel>], iteration_bounds = array<i64: 2>, scalar_prefetch = 0 : i64, scratch_operands = 0 : i64, tpu.core_type = #tpu.core_type<tc>, window_params = [{transform_indices = @transform_0, window_bounds = array<i64: 32, 204>}, {pipeline_mode = #tpu.pipeline_mode<synchronous>, transform_indices = @transform_1, window_bounds = array<i64: 204, 32>}, {pipeline_mode = #tpu.pipeline_mode<synchronous>, transform_indices = @transform_2, window_bounds = array<i64: 1, 32>}, {pipeline_mode = #tpu.pipeline_mode<synchronous>, transform_indices = @transform_3, window_bounds = array<i64: 32, 32>}, {pipeline_mode = #tpu.pipeline_mode<synchronous>, transform_indices = @transform_4, window_bounds = array<i64: 1, 32>}, {pipeline_mode = #tpu.pipeline_mode<synchronous>, transform_indices = @transform_5, window_bounds = array<i64: 32, 192>}, {pipeline_mode = #tpu.pipeline_mode<synchronous>, transform_indices = @transform_6, window_bounds = array<i64: 1, 192>}, {pipeline_mode = #tpu.pipeline_mode<synchronous>, transform_indices = @transform_7, window_bounds = array<i64: 32, 192>}, {pipeline_mode = #tpu.pipeline_mode<synchronous>, transform_indices = @transform_8, window_bounds = array<i64: 1, 192>}, {transform_indices = @transform_9, window_bounds = array<i64: 32, 192>}, {transform_indices = @transform_10, window_bounds = array<i64: 32, 192>}]} {
    %c0 = arith.constant 0 : index
    %c0_0 = arith.constant 0 : index
    %0 = vector.load %arg1[%c0, %c0_0] : memref<32x204xf32, #tpu.memory_space<vmem>>, vector<32x204xf32>
    %c0_1 = arith.constant 0 : index
    %c0_2 = arith.constant 0 : index
    %1 = vector.load %arg2[%c0_1, %c0_2] : memref<204x32xf32, #tpu.memory_space<vmem>>, vector<204x32xf32>
    %cst = arith.constant dense<0.000000e+00> : vector<32x32xf32>
    %2 = tpu.matmul %0, %1, %cst {dimension_numbers = #tpu.dot_dimension_numbers<[1], [0], [0], [1], [0, 0, 1, 1], [], []>} : vector<32x204xf32>, vector<204x32xf32>, vector<32x32xf32> -> vector<32x32xf32>
    %c0_3 = arith.constant 0 : index
    %c0_4 = arith.constant 0 : index
    %3 = vector.load %arg3[%c0_3, %c0_4] : memref<1x32xf32, #tpu.memory_space<vmem>>, vector<1x32xf32>
    %4 = vector.broadcast %3 : vector<1x32xf32> to vector<32x32xf32>
    %5 = arith.addf %2, %4 : vector<32x32xf32>
    %cst_5 = arith.constant 0.000000e+00 : f32
    %6 = vector.broadcast %cst_5 : f32 to vector<32x32xf32>
    %7 = arith.maximumf %5, %6 : vector<32x32xf32>
    %c0_6 = arith.constant 0 : index
    %c0_7 = arith.constant 0 : index
    %8 = vector.load %arg4[%c0_6, %c0_7] : memref<32x32xf32, #tpu.memory_space<vmem>>, vector<32x32xf32>
    %cst_8 = arith.constant dense<0.000000e+00> : vector<32x32xf32>
    %9 = tpu.matmul %7, %8, %cst_8 {dimension_numbers = #tpu.dot_dimension_numbers<[1], [0], [0], [1], [0, 0, 1, 1], [], []>} : vector<32x32xf32>, vector<32x32xf32>, vector<32x32xf32> -> vector<32x32xf32>
    %c0_9 = arith.constant 0 : index
    %c0_10 = arith.constant 0 : index
    %10 = vector.load %arg5[%c0_9, %c0_10] : memref<1x32xf32, #tpu.memory_space<vmem>>, vector<1x32xf32>
    %11 = vector.broadcast %10 : vector<1x32xf32> to vector<32x32xf32>
    %12 = arith.addf %9, %11 : vector<32x32xf32>
    %cst_11 = arith.constant 0.000000e+00 : f32
    %13 = vector.broadcast %cst_11 : f32 to vector<32x32xf32>
    %14 = arith.maximumf %12, %13 : vector<32x32xf32>
    %c0_12 = arith.constant 0 : index
    %c0_13 = arith.constant 0 : index
    %15 = vector.load %arg6[%c0_12, %c0_13] : memref<32x192xf32, #tpu.memory_space<vmem>>, vector<32x192xf32>
    %cst_14 = arith.constant dense<0.000000e+00> : vector<32x192xf32>
    %16 = tpu.matmul %14, %15, %cst_14 {dimension_numbers = #tpu.dot_dimension_numbers<[1], [0], [0], [1], [0, 0, 1, 1], [], []>} : vector<32x32xf32>, vector<32x192xf32>, vector<32x192xf32> -> vector<32x192xf32>
    %c0_15 = arith.constant 0 : index
    %c0_16 = arith.constant 0 : index
    %17 = vector.load %arg7[%c0_15, %c0_16] : memref<1x192xf32, #tpu.memory_space<vmem>>, vector<1x192xf32>
    %18 = vector.broadcast %17 : vector<1x192xf32> to vector<32x192xf32>
    %19 = arith.addf %16, %18 : vector<32x192xf32>
    %c0_17 = arith.constant 0 : index
    %c0_18 = arith.constant 0 : index
    %20 = vector.load %arg10[%c0_17, %c0_18] : memref<32x192xf32, #tpu.memory_space<vmem>>, vector<32x192xf32>
    tpu.vector_store %arg10[%c0_17, %c0_18], %19 {strides = array<i32>} : memref<32x192xf32, #tpu.memory_space<vmem>>, vector<32x192xf32>,
    %c0_19 = arith.constant 0 : index
    %c0_20 = arith.constant 0 : index
    %21 = vector.load %arg8[%c0_19, %c0_20] : memref<32x192xf32, #tpu.memory_space<vmem>>, vector<32x192xf32>
    %cst_21 = arith.constant dense<0.000000e+00> : vector<32x192xf32>
    %22 = tpu.matmul %14, %21, %cst_21 {dimension_numbers = #tpu.dot_dimension_numbers<[1], [0], [0], [1], [0, 0, 1, 1], [], []>} : vector<32x32xf32>, vector<32x192xf32>, vector<32x192xf32> -> vector<32x192xf32>
    %c0_22 = arith.constant 0 : index
    %c0_23 = arith.constant 0 : index
    %23 = vector.load %arg9[%c0_22, %c0_23] : memref<1x192xf32, #tpu.memory_space<vmem>>, vector<1x192xf32>
    %24 = vector.broadcast %23 : vector<1x192xf32> to vector<32x192xf32>
    %25 = arith.addf %22, %24 : vector<32x192xf32>
    %c0_24 = arith.constant 0 : index
    %c0_25 = arith.constant 0 : index
    %26 = vector.load %arg11[%c0_24, %c0_25] : memref<32x192xf32, #tpu.memory_space<vmem>>, vector<32x192xf32>
    tpu.vector_store %arg11[%c0_24, %c0_25], %25 {strides = array<i32>} : memref<32x192xf32, #tpu.memory_space<vmem>>, vector<32x192xf32>,
    return
  }
  func.func @transform_0(%arg0: i32) -> (i32, i32) {
    %c0_i32 = arith.constant 0 : i32
    %c0_i32_0 = arith.constant 0 : i32
    return %arg0, %c0_i32 : i32, i32
  }
  func.func @transform_1(%arg0: i32) -> (i32, i32) {
    %c0_i32 = arith.constant 0 : i32
    %c0_i32_0 = arith.constant 0 : i32
    %c0_i32_1 = arith.constant 0 : i32
    return %c0_i32, %c0_i32_0 : i32, i32
  }
  func.func @transform_2(%arg0: i32) -> (i32, i32) {
    %c0_i32 = arith.constant 0 : i32
    %c0_i32_0 = arith.constant 0 : i32
    %c0_i32_1 = arith.constant 0 : i32
    return %c0_i32, %c0_i32_0 : i32, i32
  }
  func.func @transform_3(%arg0: i32) -> (i32, i32) {
    %c0_i32 = arith.constant 0 : i32
    %c0_i32_0 = arith.constant 0 : i32
    %c0_i32_1 = arith.constant 0 : i32
    return %c0_i32, %c0_i32_0 : i32, i32
  }
  func.func @transform_4(%arg0: i32) -> (i32, i32) {
    %c0_i32 = arith.constant 0 : i32
    %c0_i32_0 = arith.constant 0 : i32
    %c0_i32_1 = arith.constant 0 : i32
    return %c0_i32, %c0_i32_0 : i32, i32
  }
  func.func @transform_5(%arg0: i32) -> (i32, i32) {
    %c0_i32 = arith.constant 0 : i32
    %c0_i32_0 = arith.constant 0 : i32
    %c0_i32_1 = arith.constant 0 : i32
    return %c0_i32, %c0_i32_0 : i32, i32
  }
  func.func @transform_6(%arg0: i32) -> (i32, i32) {
    %c0_i32 = arith.constant 0 : i32
    %c0_i32_0 = arith.constant 0 : i32
    %c0_i32_1 = arith.constant 0 : i32
    return %c0_i32, %c0_i32_0 : i32, i32
  }
  func.func @transform_7(%arg0: i32) -> (i32, i32) {
    %c0_i32 = arith.constant 0 : i32
    %c0_i32_0 = arith.constant 0 : i32
    %c0_i32_1 = arith.constant 0 : i32
    return %c0_i32, %c0_i32_0 : i32, i32
  }
  func.func @transform_8(%arg0: i32) -> (i32, i32) {
    %c0_i32 = arith.constant 0 : i32
    %c0_i32_0 = arith.constant 0 : i32
    %c0_i32_1 = arith.constant 0 : i32
    return %c0_i32, %c0_i32_0 : i32, i32
  }
  func.func @transform_9(%arg0: i32) -> (i32, i32) {
    %c0_i32 = arith.constant 0 : i32
    %c0_i32_0 = arith.constant 0 : i32
    return %arg0, %c0_i32 : i32, i32
  }
  func.func @transform_10(%arg0: i32) -> (i32, i32) {
    %c0_i32 = arith.constant 0 : i32
    %c0_i32_0 = arith.constant 0 : i32
    return %arg0, %c0_i32 : i32, i32
  }
}

</mosaic_0001>

<bundles_post_ra>
// kernel: tpu_custom_call.1
= control target key start
LH: loop header
LB: loop body
LE: loop exit
PB: predicated region body
PF: predicated region fallthrough
CT: control target
= control target key end

     0   :  { %s1522_s0 = inlined_call_operand.vmem [shape: f32[60,204], index: 0, kind: input, shape index: {}]   ;;  %s1523_s1 = inlined_call_operand.vmem [shape: f32[204,32], index: 1, kind: input, shape index: {}]   ;;  %s1524_s2 = inlined_call_operand.vmem [shape: f32[1,32], index: 2, kind: input, shape index: {}]   ;;  %s1525_s3 = inlined_call_operand.hbm [shape: f32[32,32], index: 3, kind: input, shape index: {}]   ;;  %s1526_s4 = inlined_call_operand.vmem [shape: f32[1,32], index: 4, kind: input, shape index: {}]   ;;  %s1527_s5 = inlined_call_operand.vmem [shape: f32[32,192], index: 5, kind: input, shape index: {}]   ;;  %s1528_s6 = inlined_call_operand.vmem [shape: f32[1,192], index: 6, kind: input, shape index: {}]   ;;  %s1529_s7 = inlined_call_operand.vmem [shape: f32[32,192], index: 7, kind: input, shape index: {}]   ;;  %s1530_s8 = inlined_call_operand.vmem [shape: f32[1,192], index: 8, kind: input, shape index: {}]   ;;  %s1531_s9 = inlined_call_operand.hbm [shape: f32[60,192], index: 9, kind: output, shape index: {0}]   ;;  %s1532_s10 = inlined_call_operand.hbm [shape: f32[60,192], index: 10, kind: output, shape index: {1}]  }
   0x1   :  { %1534 = sst [smem:[#allocation11_spill]] %s1522_s0 }
   0x2   :  { %1535 = sst [smem:[#allocation12_spill]] %s1523_s1 }
   0x3   :  { %1536 = sst [smem:[#allocation13_spill]] %s1525_s3 }
   0x4   :  { %16 = vsyncpa [#allocation3], 0 }
   0x5   :  { %17 = vsyncpa [#allocation4], 0 }
   0x6   :  { %19 = vsyncpa [#allocation4 + $0x1], 0 }
   0x7   :  { %20 = vsyncpa [#allocation7], 0 }
   0x8   :  { %22 = vsyncpa [#allocation7 + $0x1], 0  ;;  %s1196_s13 = smov 0   ;;  %s1198_s14 = smov 0  }
   0x9   :  { %s1200_s15 = smov 0   ;;  %s1202_s16 = smov 0  }
   0xa LB: > { %s1217_s17 = sadd.s32 4294967295, %s1134_s16   ;;  %s884_s18 = sadd.s32 4294967294, %s1134_s16   ;;  %s1134_s16 = sphi %s1202_s16, %s1546_s16   ;;  %s1130_s15 = sphi %s1200_s15, %s1545_s15   ;;  %s1126_s14 = sphi %s1198_s14, %s1544_s14   ;;  %s1122_s13 = sphi %s1196_s13, %s1543_s13  }
   0xb   : > { %s1221_s19 = sadd.s32 1, %s1134_s16   ;;  %s229_s20 = sadd.s32 1, %s1130_s15 }
   0xc   : > { %s226_s21 = ssub.s32 %s1134_s16, %s1221_s19  ;;  %p239_p0 = scmp.ne.s32.totalorder %s1130_s15, %s1126_s14 }
   0xd   : > { %p227_p1 = scmp.eq.s32.totalorder %s226_s21, 0  ;;  %p240_p2 = scmp.eq.s32.totalorder %s1217_s17, 1 }
   0xe   : > { %p245_p3 = scmp.ne.s32.totalorder %s1126_s14, %s1122_s13  ;;  %p246_p4 = scmp.eq.s32.totalorder %s884_s18, 1 }
   0xf   : > { %s1232_s22 = scalar_select %p227_p1, %s1130_s15, %s229_s20  }
  0x10   : > { %p1234_p5 = por %p240_p2, %p239_p0  ;;  %p1238_p6 = por %p246_p4, %p245_p3 }
  0x11   : > { %p885_p7 = scmp.ge.s32.totalorder %s1134_s16, 1  ;;  %p279_p8 = scmp.lt.s32.totalorder %s1134_s16, 3 }
  0x12   : > { %p964_p9 = scmp.eq.s32.totalorder %s1217_s17, 0  ;;  %s1539_s3 = sld [smem:[#allocation13_spill]] }
  0x13   : > { %p280_p10 = pnand %p885_p7, %p279_p8  ;;  %s1136_s28 = smov [#allocation2]  }
  0x14   : > { %s298_s29 = sshll.u32 %s1136_s28, 4  ;;  %s1137_s30 = smov 128   ;;  %s299_s29 = int_to_ptr.vmem [resolvable:$true] %s298_s29 }
  0x15   : > { %p953_p11 = pneg %p280_p10  ;;  %s1138_s11 = smov 8  }
  0x16   : > { %339 = sbr.rel (%p280_p10) target bundleno = 557 (0x22d), region = 56 }
  0x17   : > { %p954_p12 = pnand %p964_p9, %p953_p11 }
  0x18   : > { %s296_s27 = sshll.u32 %s1539_s3, 4  ;;  %s297_s27 = int_to_ptr.hbm [resolvable:$true] %s296_s27 }
  0x19   : > { %956 = dma.hbm_to_vmem [thread:$0]  (!%p954_p12), %s297_s27, 512, %s299_s29, [#allocation3], %s1137_s30, %s1137_s30, %s1138_s11  }
  0x1b   : > { %1109 = dma.done.wait (%p964_p9), [#allocation3], 512  }
  0x1c   : > { %1111 = vsyncadd (%p964_p9), [#allocation3], 4294966784  ;;  %s1540_s1 = sld [smem:[#allocation12_spill]]  ;;  %vm444_vm0 = vcmask 1043456   ;;  %s892_s26 = sshll.u32 %s1217_s17, 2  ;;  %vm431_vm1 = vcmask 621568  }
  0x1d   : > { %p385_p13 = scmp.lt.s32.totalorder %s892_s26, 7  ;;  %s1541_s0 = sld [smem:[#allocation11_spill]]  ;;  %v513_v34 = vld [vmem:[#allocation2 + $0x18] sm:$0xff]  ;;  %v512_v35 = vld [vmem:[#allocation2 + $0x10] sm:$0xff]  ;;  %v511_v37 = vld [vmem:[#allocation2 + $0x8] sm:$0xff]  ;;  %vm518_vm2 = vcmask 261120  }
  0x1e   : > { %543 = vmatpush.msra.mxu2 %v513_v34  ;;  %v510_v38 = vld [vmem:[#allocation2] sm:$0xff]  ;;  %v570_v43 = vld [vmem:[%s1527_s5 + $0x30] sm:$0xff]  ;;  %v571_v44 = vld [vmem:[%s1527_s5 + $0x38] sm:$0xff]  ;;  %s1427_s20 = sand.u32 1, %s1126_s14   ;;  %vm649_vm3 = vcmask 523264   ;;  %s1533_s3 = sshll.u32 %s1217_s17, 6 }
  0x1f   : > { %s1548_s26 = smov (!%p385_p13, %s892_s26), 7  ;;  %v1004_v42 = vld [vmem:[%s1524_s2] ss:$0 sm:$0xff]  ;;  %v664_v45 = vld [vmem:[%s1529_s7 + $0x38] sm:$0xff]  ;;  %602 = vmatpush.msra.mxu3 %v570_v43  ;;  %v569_v63 = vld [vmem:[%s1527_s5 + $0x28] sm:$0xff]  ;;  %s755_s18 = scalar_lea.hbm %s1531_s9, %s1533_s3 }
  0x20   : > { %s930_s27 = sshll.u32 %s1548_s26, 4  ;;  %544 = vmatpush.msra.mxu2 %v512_v35  ;;  %v568_v62 = vld [vmem:[%s1527_s5 + $0x20] sm:$0xff]  ;;  %s758_s26 = sshll.u32 %s755_s18, 4  ;;  %s759_s26 = int_to_ptr.hbm [resolvable:$true] %s758_s26 }
  0x21   : > { %603 = vmatpush.msra.mxu3 %v568_v62  ;;  %s1050_s28 = sshra.s32 %s759_s26, 4  ;;  %s1056_s18 = scalar_lea.hbm %s1531_s9, 128  ;;  %s1051_s28 = int_to_ptr.hbm [resolvable:$true] %s1050_s28 }
  0x22   : > { %v416_v0 = vld [vmem:[%s1540_s1 + $0x78] sm:$0xff]  ;;  %v415_v1 = vld [vmem:[%s1540_s1 + $0x70] sm:$0xff]  ;;  %v414_v2 = vld [vmem:[%s1540_s1 + $0x68] sm:$0xff]  ;;  %545 = vmatpush.msra.mxu2 %v511_v37  ;;  %s1052_s29 = scalar_lea.hbm %s1051_s28, 64  ;;  %p1057_p3 = scmp.lt.s32.totalorder %s1051_s28, %s1531_s9 }
  0x23   : > { %448 = vmatpush.msra.mxu0 %v416_v0  ;;  %v413_v3 = vld [vmem:[%s1540_s1 + $0x60] sm:$0xff]  ;;  %v426_v4 = vld [vmem:[%s1540_s1 + $0xc8] sm:$0xf]  ;;  %v412_v6 = vld [vmem:[%s1540_s1 + $0x58] sm:$0xff]  ;;  %s1322_s25 = scalar_lea.vmem %s1541_s0, %s930_s27  ;;  %p1053_p0 = scmp.ne.s32.totalorder %s1051_s28, %s1052_s29 }
  0x24   : > { %v425_v5 = vld [vmem:[%s1540_s1 + $0xc0] sm:$0xff]  ;;  %935 = vmatpush.msk.msra.mxu1 %vm444_vm0, %v426_v4  ;;  %v424_v7 = vld [vmem:[%s1540_s1 + $0xb8] sm:$0xff]  ;;  %v411_v8 = vld [vmem:[%s1540_s1 + $0x50] sm:$0xff]  ;;  %546 = vmatpush.msra.mxu2 %v510_v38  ;;  %p1058_p4 = scmp.lt.s32.totalorder %s1056_s18, %s1052_s29 }
  0x25   : > { %449 = vmatpush.msra.mxu0 %v415_v1  ;;  %v423_v9 = vld [vmem:[%s1540_s1 + $0xb0] sm:$0xff]  ;;  %v410_v10 = vld [vmem:[%s1540_s1 + $0x48] sm:$0xff]  ;;  %v409_v12 = vld [vmem:[%s1540_s1 + $0x40] sm:$0xff]  ;;  %p1054_p1 = pnand %p1053_p0, %p1234_p5 }
  0x26   : > { %936 = vmatpush.msra.mxu1 %v425_v5  ;;  %v422_v11 = vld [vmem:[%s1540_s1 + $0xa8] sm:$0xff]  ;;  %v421_v13 = vld [vmem:[%s1540_s1 + $0xa0] sm:$0xff]  ;;  %v408_v14 = vld [vmem:[%s1540_s1 + $0x38] sm:$0xff]  ;;  %631 = vmatpush.msrb.mxu2 %v571_v44  ;;  %p1059_p7 = por %p1058_p4, %p1057_p3 }
  0x27   : > { %450 = vmatpush.msra.mxu0 %v414_v2  ;;  %v420_v15 = vld [vmem:[%s1540_s1 + $0x98] sm:$0xff]  ;;  %v407_v16 = vld [vmem:[%s1540_s1 + $0x30] sm:$0xff]  ;;  %v406_v18 = vld [vmem:[%s1540_s1 + $0x28] sm:$0xff]  ;;  %p1055_p2 = pneg %p1054_p1 }
  0x28   : > { %937 = vmatpush.msra.mxu1 %v424_v7  ;;  %v419_v17 = vld [vmem:[%s1540_s1 + $0x90] sm:$0xff]  ;;  %v418_v19 = vld [vmem:[%s1540_s1 + $0x88] sm:$0xff]  ;;  %v405_v20 = vld [vmem:[%s1540_s1 + $0x20] sm:$0xff]  ;;  %632 = vmatpush.msrb.mxu2 %v569_v63 }
  0x29   : > { %451 = vmatpush.msra.mxu0 %v413_v3  ;;  %v417_v21 = vld [vmem:[%s1540_s1 + $0x80] sm:$0xff]  ;;  %v396_v22 = vld [vmem:[%s1322_s25 + $0x18] sm:$0xff]  ;;  %v403_v24 = vld [vmem:[%s1540_s1 + $0x10] sm:$0xff]  ;;  %p1060_p8 = pnand %p1059_p7, %p1055_p2 }
  0x2a   : > { %938 = vmatpush.msra.mxu1 %v423_v9  ;;  %v404_v23 = vld [vmem:[%s1540_s1 + $0x18] sm:$0xff]  ;;  %v402_v25 = vld [vmem:[%s1540_s1 + $0x8] sm:$0xff]  ;;  %v401_v26 = vld [vmem:[%s1540_s1] sm:$0xff] }
  0x2b   : > { %452 = vmatpush.msra.mxu0 %v412_v6  ;;  %v393_v27 = vld [vmem:[%s1322_s25] sm:$0xff]  ;;  %v398_v28 = vld [vmem:[%s1322_s25 + $0x28] sm:$0xff]  ;;  %v395_v29 = vld [vmem:[%s1322_s25 + $0x10] sm:$0xff] }
  0x2c   : > { %939 = vmatpush.msra.mxu1 %v422_v11  ;;  %v400_v30 = vld [vmem:[%s1322_s25 + $0x38] sm:$0xff]  ;;  %v397_v31 = vld [vmem:[%s1322_s25 + $0x20] sm:$0xff]  ;;  %v399_v32 = vld [vmem:[%s1322_s25 + $0x30] sm:$0xff] }
  0x2d   : > { %453 = vmatpush.msra.mxu0 %v411_v8  ;;  %v394_v33 = vld [vmem:[%s1322_s25 + $0x8] sm:$0xff]  ;;  %v566_v1 = vld [vmem:[%s1527_s5 + $0x10] sm:$0xff]  ;;  %v567_v2 = vld [vmem:[%s1527_s5 + $0x18] sm:$0xff]  ;;  %s890_s25 = sshll.u32 %s1427_s20, 6 }
  0x2e   : > { %940 = vmatpush.msra.mxu1 %v421_v13  ;;  %v662_v0 = vld [vmem:[%s1529_s7 + $0x28] sm:$0xff]  ;;  %v660_v3 = vld [vmem:[%s1529_s7 + $0x18] sm:$0xff]  ;;  %604 = vmatpush.msra.mxu3 %v566_v1  ;;  %v661_v8 = vld [vmem:[%s1529_s7 + $0x20] sm:$0xff]  ;;  %s1436_s30 = scalar_lea.vmem [#allocation6], %s890_s25  ;;  %s1440_s27 = scalar_lea.vmem [#allocation5], %s890_s25 }
  0x2f   : > { %454 = vmatpush.msra.mxu0 %v410_v10  ;;  %633 = vmatpush.msrb.mxu2 %v567_v2  ;;  %v658_v6 = vld [vmem:[%s1529_s7 + $0x8] sm:$0xff]  ;;  %v1005_v10 = vld [vmem:[%s1526_s4] ss:$0 sm:$0xff]  ;;  %s756_s21 = sshll.u32 %s1440_s27, 4  ;;  %s738_s25 = scalar_lea.sflag [#allocation4], %s1427_s20  ;;  %s757_s21 = int_to_ptr.vmem [resolvable:$true] %s756_s21 }
  0x30   : > { %941 = vmatpush.msra.mxu1 %v420_v15 }
  0x31   : > { %455 = vmatpush.msra.mxu0 %v409_v12 }
  0x32   : > { %942 = vmatpush.msra.mxu1 %v419_v17 }
  0x33   : > { %456 = vmatpush.msra.mxu0 %v408_v14 }
  0x34   : > { %943 = vmatpush.msra.mxu1 %v418_v19 }
  0x35   : > { %457 = vmatpush.msra.mxu0 %v407_v16 }
  0x36   : > { %944 = vmatpush.msra.mxu1 %v417_v21 }
  0x37   : > { %458 = vmatpush.msra.mxu0 %v406_v18  ;;  %897 = vmatmul.msk.f32.vlgmr.msra.gmra.mxu1 %vm431_vm1, %v396_v22 }
  0x38   : > { %712 = vmatpush.msrb.mxu1 %v664_v45 }
  0x39   : > { %459 = vmatpush.msra.mxu0 %v405_v20 }
  0x3a   : > { %713 = vmatpush.msrb.mxu1 %v662_v0 }
  0x3b   : > { %460 = vmatpush.msra.mxu0 %v404_v23 }
  0x3c   : > { %714 = vmatpush.msrb.mxu1 %v660_v3 }
  0x3d   : > { %461 = vmatpush.msra.mxu0 %v403_v24  ;;  %v665_v24 = vld [vmem:[%s1530_s8] sm:$0x3] }
  0x3e   : > { %715 = vmatpush.msrb.mxu1 %v658_v6 }
  0x3f   : > { %462 = vmatpush.msra.mxu0 %v402_v25  ;;  %898 = vmatmul.msk.f32.gmra.mxu1 %vm431_vm1, %v398_v28  ;;  %v668_v25 = vperm.slane %v665_v24, 1 }
  0x41   : > { %463 = vmatpush.msra.mxu0 %v401_v26  ;;  %v572_v26 = vld [vmem:[%s1528_s6] sm:$0x3] }
  0x42   : > { %464 = vmatmul.f32.vlgmr.msra.gmra.mxu0 %v393_v27 }
  0x43   : > { %895 = vmatpush.msk.msrb.mxu0 %vm444_vm0, %v426_v4  ;;  %v564_v4 = vld [vmem:[%s1527_s5] sm:$0xff] }
  0x44   : > { %605 = vmatpush.msra.mxu3 %v564_v4 }
  0x45   : > { %484 = vmatpush.msrb.mxu0 %v425_v5  ;;  %v565_v5 = vld [vmem:[%s1527_s5 + $0x8] sm:$0xff] }
  0x46   : > { %634 = vmatpush.msrb.mxu2 %v565_v5 }
  0x47   : > { %485 = vmatpush.msrb.mxu0 %v424_v7  ;;  %899 = vmatmul.msk.f32.gmra.mxu1 %vm431_vm1, %v400_v30  ;;  %v663_v7 = vld [vmem:[%s1529_s7 + $0x30] sm:$0xff]  ;;  %v575_v30 = vperm.slane %v572_v26, 1 }
  0x48   : > { %683 = vmatpush.msrb.mxu3 %v663_v7 }
  0x49   : > { %486 = vmatpush.msrb.mxu0 %v423_v9  ;;  %v659_v9 = vld [vmem:[%s1529_s7 + $0x10] sm:$0xff] }
  0x4a   : > { %467 = vmatmul.f32.gmra.mxu0 %v395_v29  ;;  %684 = vmatpush.msrb.mxu3 %v661_v8  ;;  %v574_v29 = vperm.slane %v572_v26, 0 }
  0x4b   : > { %487 = vmatpush.msrb.mxu0 %v422_v11  ;;  %v657_v11 = vld [vmem:[%s1529_s7] sm:$0xff] }
  0x4c   : > { %685 = vmatpush.msrb.mxu3 %v659_v9 }
  0x4d   : > { %488 = vmatpush.msrb.mxu0 %v421_v13 }
  0x4e   : > { %686 = vmatpush.msrb.mxu3 %v657_v11 }
  0x4f   : > { %489 = vmatpush.msrb.mxu0 %v420_v15 }
  0x51   : > { %490 = vmatpush.msrb.mxu0 %v419_v17 }
  0x52   : > { %470 = vmatmul.f32.gmra.mxu0 %v397_v31 }
  0x53   : > { %491 = vmatpush.msrb.mxu0 %v418_v19 }
  0x55   : > { %492 = vmatpush.msrb.mxu0 %v417_v21 }
  0x5a   : > { %473 = vmatmul.f32.gmra.mxu0 %v399_v32 }
  0x62   : > { %896 = vmatmul.msk.f32.vlgmr.msrb.gmra.mxu0 %vm431_vm1, %v394_v33 }
  0xb4   : > { %v497_v47 = vpop.f32.mrf.mxu1 }
  0xbc   : > { %v500_v53 = vpop.f32.mrf.mxu1 }
  0xbf   : > { %v465_v36 = vpop.f32.mrf.mxu0 }
  0xc0   : > { %v466_v46 = vadd.f32 %v1004_v42, %v465_v36 }
  0xc4   : > { %v503_v59 = vpop.f32.mrf.mxu1 }
  0xc7   : > { %v468_v39 = vpop.f32.mrf.mxu0 }
  0xc8   : > { %v469_v50 = vadd.f32 %v1004_v42, %v468_v39 }
  0xca   : > { %v498_v52 = vadd.f32 %v497_v47, %v469_v50 }
  0xcc   : > { %v507_v54 = vmax.f32 %v498_v52, 0.0 }
  0xcf   : > { %v471_v40 = vpop.f32.mrf.mxu0 }
  0xd0   : > { %v472_v55 = vadd.f32 %v1004_v42, %v471_v40 }
  0xd2   : > { %v501_v56 = vadd.f32 %v500_v53, %v472_v55  ;;  %v667_v53 = vperm.slane %v665_v24, 0 }
  0xd4   : > { %v508_v57 = vmax.f32 %v501_v56, 0.0 }
  0xd7   : > { %v474_v41 = vpop.f32.mrf.mxu0 }
  0xd8   : > { %v475_v58 = vadd.f32 %v1004_v42, %v474_v41 }
  0xda   : > { %v504_v60 = vadd.f32 %v503_v59, %v475_v58 }
  0xdc   : > { %v509_v61 = vmax.f32 %v504_v60, 0.0 }
  0xdf   : > { %v494_v48 = vpop.f32.mrf.mxu0 }
  0xe0   : > { %v495_v49 = vadd.f32 %v494_v48, %v466_v46 }
  0xe2   : > { %v506_v51 = vmax.f32 %v495_v49, 0.0 }
  0xe4   : > { %900 = vmatmul.msk.f32.vlgmr.msra.gmra.mxu2 %vm518_vm2, %v506_v51 }
  0xec   : > { %901 = vmatmul.msk.f32.gmra.mxu2 %vm518_vm2, %v507_v54 }
  0xf4   : > { %902 = vmatmul.msk.f32.gmra.mxu2 %vm518_vm2, %v508_v57 }
  0xfc   : > { %903 = vmatmul.msk.f32.gmra.mxu2 %vm518_vm2, %v509_v61 }
 0x167   : > { %v548_v12 = vpop.f32.mrf.mxu2 }
 0x168   : > { %v549_v13 = vadd.f32 %v1005_v10, %v548_v12 }
 0x16a   : > { %v560_v14 = vmax.f32 %v549_v13, 0.0 }
 0x16c   : > { %904 = vmatmul.msk.f32.vlgmr.msra.gmra.mxu3 %vm518_vm2, %v560_v14  ;;  %908 = vmatmul.msk.f32.vlgmr.msrb.gmra.mxu2 %vm518_vm2, %v560_v14 }
 0x16d   : > { %916 = vmatmul.msk.f32.vlgmr.msrb.gmra.mxu1 %vm518_vm2, %v560_v14 }
 0x16f   : > { %v551_v15 = vpop.f32.mrf.mxu2 }
 0x170   : > { %v552_v16 = vadd.f32 %v1005_v10, %v551_v15 }
 0x172   : > { %v561_v17 = vmax.f32 %v552_v16, 0.0 }
 0x174   : > { %905 = vmatmul.msk.f32.gmra.mxu3 %vm518_vm2, %v561_v17  ;;  %909 = vmatmul.msk.f32.gmra.mxu2 %vm518_vm2, %v561_v17 }
 0x175   : > { %917 = vmatmul.msk.f32.gmra.mxu1 %vm518_vm2, %v561_v17 }
 0x177   : > { %v554_v18 = vpop.f32.mrf.mxu2 }
 0x178   : > { %v555_v19 = vadd.f32 %v1005_v10, %v554_v18 }
 0x17a   : > { %v562_v20 = vmax.f32 %v555_v19, 0.0 }
 0x17c   : > { %906 = vmatmul.msk.f32.gmra.mxu3 %vm518_vm2, %v562_v20  ;;  %910 = vmatmul.msk.f32.gmra.mxu2 %vm518_vm2, %v562_v20 }
 0x17d   : > { %918 = vmatmul.msk.f32.gmra.mxu1 %vm518_vm2, %v562_v20 }
 0x17f   : > { %v557_v21 = vpop.f32.mrf.mxu2 }
 0x180   : > { %v558_v22 = vadd.f32 %v1005_v10, %v557_v21 }
 0x182   : > { %v563_v23 = vmax.f32 %v558_v22, 0.0 }
 0x184   : > { %907 = vmatmul.msk.f32.gmra.mxu3 %vm518_vm2, %v563_v23  ;;  %911 = vmatmul.msk.f32.gmra.mxu2 %vm518_vm2, %v563_v23 }
 0x185   : > { %919 = vmatmul.msk.f32.gmra.mxu1 %vm518_vm2, %v563_v23 }
 0x18c   : > { %912 = vmatmul.msk.f32.vlgmr.msrb.gmra.mxu3 %vm518_vm2, %v560_v14 }
 0x194   : > { %913 = vmatmul.msk.f32.gmra.mxu3 %vm518_vm2, %v561_v17 }
 0x19c   : > { %914 = vmatmul.msk.f32.gmra.mxu3 %vm518_vm2, %v562_v20 }
 0x1a4   : > { %915 = vmatmul.msk.f32.gmra.mxu3 %vm518_vm2, %v563_v23 }
 0x1ea   : > { %v717_v27 = vpop.f32.mrf.mxu1 }
 0x1eb   : > { %v718_v28 = vadd.f32 %v717_v27, %v668_v25 }
 0x1ed   : > { %730 = vst.msk [vmem:[%s1436_s30 + $0x8] sm:$0xff] %vm649_vm3, %v718_v28 }
 0x1ef   : > { %v607_v31 = vpop.f32.mrf.mxu3  ;;  %v636_v32 = vpop.f32.mrf.mxu2 }
 0x1f0   : > { %v608_v33 = vadd.f32 %v607_v31, %v574_v29  ;;  %v637_v34 = vadd.f32 %v636_v32, %v575_v30 }
 0x1f2   : > { %648 = vst [vmem:[%s1440_s27] sm:$0xff] %v608_v33  ;;  %v720_v35 = vpop.f32.mrf.mxu1 }
 0x1f3   : > { %650 = vst.msk [vmem:[%s1440_s27 + $0x8] sm:$0xff] %vm649_vm3, %v637_v34  ;;  %v721_v36 = vadd.f32 %v720_v35, %v668_v25 }
 0x1f5   : > { %732 = vst.msk [vmem:[%s1436_s30 + $0x18] sm:$0xff] %vm649_vm3, %v721_v36 }
 0x1f7   : > { %v610_v37 = vpop.f32.mrf.mxu3  ;;  %v639_v38 = vpop.f32.mrf.mxu2 }
 0x1f8   : > { %v611_v39 = vadd.f32 %v610_v37, %v574_v29  ;;  %v640_v40 = vadd.f32 %v639_v38, %v575_v30 }
 0x1fa   : > { %651 = vst [vmem:[%s1440_s27 + $0x10] sm:$0xff] %v611_v39  ;;  %v723_v41 = vpop.f32.mrf.mxu1 }
 0x1fb   : > { %652 = vst.msk [vmem:[%s1440_s27 + $0x18] sm:$0xff] %vm649_vm3, %v640_v40  ;;  %v724_v42 = vadd.f32 %v723_v41, %v668_v25 }
 0x1fd   : > { %734 = vst.msk [vmem:[%s1436_s30 + $0x28] sm:$0xff] %vm649_vm3, %v724_v42 }
 0x1ff   : > { %v613_v43 = vpop.f32.mrf.mxu3  ;;  %v642_v44 = vpop.f32.mrf.mxu2 }
 0x200   : > { %v614_v45 = vadd.f32 %v613_v43, %v574_v29  ;;  %v643_v46 = vadd.f32 %v642_v44, %v575_v30 }
 0x202   : > { %653 = vst [vmem:[%s1440_s27 + $0x20] sm:$0xff] %v614_v45  ;;  %v726_v47 = vpop.f32.mrf.mxu1 }
 0x203   : > { %654 = vst.msk [vmem:[%s1440_s27 + $0x28] sm:$0xff] %vm649_vm3, %v643_v46  ;;  %v727_v48 = vadd.f32 %v726_v47, %v668_v25 }
 0x205   : > { %736 = vst.msk [vmem:[%s1436_s30 + $0x38] sm:$0xff] %vm649_vm3, %v727_v48 }
 0x207   : > { %v616_v49 = vpop.f32.mrf.mxu3  ;;  %v645_v50 = vpop.f32.mrf.mxu2 }
 0x208   : > { %v617_v51 = vadd.f32 %v616_v49, %v574_v29  ;;  %v646_v52 = vadd.f32 %v645_v50, %v575_v30 }
 0x20a   : > { %655 = vst [vmem:[%s1440_s27 + $0x30] sm:$0xff] %v617_v51 }
 0x20b   : > { %656 = vst.msk [vmem:[%s1440_s27 + $0x38] sm:$0xff] %vm649_vm3, %v646_v52 }
 0x20c   : > { %1063 = shalt.err (!%p1060_p8)
}
 0x20d   : > { %s1139_s27 = smov 256   ;;  %s1140_s1 = smov 16  }
 0x20e   : > { %949 = dma.vmem_to_hbm [thread:$0]  (%p1234_p5), %s757_s21, 1024, %s759_s26, %s738_s25, %s1139_s27, %s1139_s27, %s1140_s1  }
 0x20f   : > { %v688_v54 = vpop.f32.mrf.mxu3  ;;  %s1542_s0 = sshll.u32 %s1217_s17, 6  ;;  %s774_s11 = sshll.u32 %s1436_s30, 4  ;;  %s775_s11 = int_to_ptr.vmem [resolvable:$true] %s774_s11 }
 0x210   : > { %v689_v55 = vadd.f32 %v688_v54, %v667_v53  ;;  %s773_s29 = scalar_lea.hbm %s1532_s10, %s1542_s0  ;;  %s743_s21 = scalar_lea.sflag [#allocation7], %s1427_s20 }
 0x211   : > { %s776_s12 = sshll.u32 %s773_s29, 4  ;;  %s1084_s3 = scalar_lea.hbm %s1532_s10, 128  ;;  %s777_s12 = int_to_ptr.hbm [resolvable:$true] %s776_s12 }
 0x212   : > { %729 = vst [vmem:[%s1436_s30] sm:$0xff] %v689_v55  ;;  %s1078_s26 = sshra.s32 %s777_s12, 4  ;;  %s1079_s26 = int_to_ptr.hbm [resolvable:$true] %s1078_s26 }
 0x213   : > { %s1080_s25 = scalar_lea.hbm %s1079_s26, 64  ;;  %p1085_p12 = scmp.lt.s32.totalorder %s1079_s26, %s1532_s10 }
 0x214   : > { %p1081_p9 = scmp.ne.s32.totalorder %s1079_s26, %s1080_s25  ;;  %p1086_p13 = scmp.lt.s32.totalorder %s1084_s3, %s1080_s25 }
 0x216   : > { %p1082_p10 = pnand %p1081_p9, %p1234_p5  ;;  %p1087_p0 = por %p1086_p13, %p1085_p12 }
 0x217   : > { %v691_v56 = vpop.f32.mrf.mxu3 }
 0x218   : > { %v692_v57 = vadd.f32 %v691_v56, %v667_v53  ;;  %p1083_p11 = pneg %p1082_p10 }
 0x21a   : > { %731 = vst [vmem:[%s1436_s30 + $0x10] sm:$0xff] %v692_v57  ;;  %p1088_p1 = pnand %p1087_p0, %p1083_p11 }
 0x21f   : > { %v694_v58 = vpop.f32.mrf.mxu3 }
 0x220   : > { %v695_v59 = vadd.f32 %v694_v58, %v667_v53 }
 0x222   : > { %733 = vst [vmem:[%s1436_s30 + $0x20] sm:$0xff] %v695_v59 }
 0x227   : > { %v697_v60 = vpop.f32.mrf.mxu3 }
 0x228   : > { %v698_v61 = vadd.f32 %v697_v60, %v667_v53 }
 0x22a   : > { %735 = vst [vmem:[%s1436_s30 + $0x30] sm:$0xff] %v698_v61 }
 0x22b   : > { %1091 = shalt.err (!%p1088_p1)
}
 0x22c   : > { %950 = dma.vmem_to_hbm [thread:$0]  (%p1234_p5), %s775_s11, 1024, %s777_s12, %s743_s21, %s1139_s27, %s1139_s27, %s1140_s1  }
 0x22d PF: > { %p966_p2 = scmp.ge.s32.totalorder %s1134_s16, 2  ;;  %s791_s20 = sand.u32 1, %s1122_s13  }
 0x22e   : > { %s792_s30 = scalar_lea.sflag [#allocation4], %s791_s20 }
 0x22f   : > { %p958_p3 = pnand %p966_p2, %p1238_p6 }
 0x231   : > { %p959_p4 = pneg %p958_p3 }
 0x233   : > { %1113 = dma.done.wait (%p959_p4), %s792_s30, 1024  }
 0x234   : > { %1115 = vsyncadd (%p959_p4), %s792_s30, 4294966272  ;;  %s802_s29 = scalar_lea.sflag [#allocation7], %s791_s20 }
 0x235   : > { %1117 = dma.done.wait (%p959_p4), %s802_s29, 1024  }
 0x236   : > { %1119 = vsyncadd (%p959_p4), %s802_s29, 4294966272  ;;  %p25_p5 = scmp.ge.s32.totalorder %s1221_s19, 4   ;;  %s1543_s13 = smov %s1126_s14 }
 0x237   : > { %s1544_s14 = smov %s1130_s15  ;;  %s1545_s15 = smov %s1232_s22 }
 0x238   : > { %s1546_s16 = smov %s1221_s19  ;;  %27 = sbr.rel (!%p25_p5) target bundleno = 10 (0xa), region = 113 }
 0x23d   :  { %808 = vsyncpa [#allocation3], 1 }
 0x23e   :  { %810 = vsyncpa [#allocation3 + $0x1], 1 }
 0x23f   :  { %811 = vsyncpa [#allocation4], 1 }
 0x240   :  { %813 = vsyncpa [#allocation4 + $0x1], 1 }
 0x241   :  { %814 = vsyncpa [#allocation7], 1 }
 0x242   :  { %816 = vsyncpa [#allocation7 + $0x1], 1 }

</bundles_post_ra>
